<compile_context>
chip_gen: v6e
topology: v6e:2x2x1
jax: 0.10.0
libtpu: 0.0.40
codegen_flags: <defaults>
</compile_context>

<pallas_src>
import jax
import jax.numpy as jnp
from jax.experimental import pallas as pl
from jax.experimental.pallas import tpu as pltpu

_MAX_DMA_CHUNKS = 4  # DMA descriptors kept in flight for the HBM->HBM copy


def identity(x: jax.Array) -> jax.Array:
    """Pallas/JAX implementation of `Identity.forward(x) -> x`.

    Identity never needs to touch the data: returning `x` unchanged is the
    fastest correct implementation on every TPU generation (no HBM traffic,
    no kernel launch).  Use `identity_copy` only when a fresh buffer is
    explicitly required.
    """
    return x


def _pick_2d_view(x: jax.Array):
    """Choose a (rows, cols) view used to chunk the HBM->HBM DMA."""
    total = x.size
    for c in (4096, 2048, 1024, 512, 256, 128):
        if total % c == 0:
            return total // c, c
    # No nice factorization: single-row view -> one whole-array DMA.
    return 1, total


def _make_copy_kernel(chunks):
    """Build an HBM->HBM copy kernel with `len(chunks)` DMAs in flight."""

    def kernel(x_hbm, o_hbm, sems):
        descs = []
        for idx, (start, size) in enumerate(chunks):  # static, unrolled
            cp = pltpu.make_async_copy(
                x_hbm.at[pl.ds(start, size), :],
                o_hbm.at[pl.ds(start, size), :],
                sems.at[idx],
            )
            cp.start()
            descs.append(cp)
        for cp in descs:
            cp.wait()

    return kernel


def identity_copy(x: jax.Array) -> jax.Array:
    """Materialize a fresh copy of `x` via direct HBM->HBM DMA."""
    if x.size == 0:
        return x

    rows, cols = _pick_2d_view(x)
    x2d = x.reshape(rows, cols)

    # Split into up to _MAX_DMA_CHUNKS contiguous row ranges so several DMAs
    # are in flight at once (overlapping descriptor issue latency).
    n_chunks = min(_MAX_DMA_CHUNKS, rows)
    chunk_rows = pl.cdiv(rows, n_chunks)
    chunks = []
    start = 0
    while start < rows:
        size = min(chunk_rows, rows - start)
        chunks.append((start, size))
        start += size

    itemsize = jnp.dtype(x.dtype).itemsize

    out2d = pl.pallas_call(
        _make_copy_kernel(chunks),
        out_shape=jax.ShapeDtypeStruct((rows, cols), x2d.dtype),
        in_specs=[pl.BlockSpec(memory_space=pl.ANY)],
        out_specs=pl.BlockSpec(memory_space=pl.ANY),
        scratch_shapes=[pltpu.SemaphoreType.DMA((len(chunks),))],
        cost_estimate=pl.CostEstimate(
            flops=0,
            transcendentals=0,
            bytes_accessed=2 * x.size * itemsize,
        ),
    )(x2d)

    return out2d.reshape(x.shape)


if __name__ == "__main__":
    key = jax.random.PRNGKey(0)

    # Small NCHW input consistent with the module: batch=2, channels=4, 16x16.
    x = jax.random.normal(key, (2, 4, 16, 16), dtype=jnp.float32)

    # Forward pass: pure no-op (the highest-value optimization).
    y = identity(x)
    jax.block_until_ready(y)
    assert y.shape == x.shape, (y.shape, x.shape)
    assert y.dtype == x.dtype, (y.dtype, x.dtype)
    assert bool(jnp.array_equal(y, x)), "identity (no-op path) mismatch"

    # Exercise the explicit-copy Pallas kernel (HBM->HBM DMA) once on the
    # small input so the TPU path is compiled and verified.
    y_copy = identity_copy(x)
    jax.block_until_ready(y_copy)
    assert y_copy.shape == x.shape, (y_copy.shape, x.shape)
    assert y_copy.dtype == x.dtype, (y_copy.dtype, x.dtype)
    assert bool(jnp.array_equal(y_copy, x)), "identity_copy mismatch (1 chunk)"

    # Slightly larger input that exercises multiple in-flight DMA chunks:
    # (2,4,64,128) f32 -> (16, 4096) view -> 4 chunked HBM->HBM copies.
    x2 = jax.random.normal(jax.random.PRNGKey(0), (2, 4, 64, 128),
                           dtype=jnp.float32)
    y2 = identity_copy(x2)
    jax.block_until_ready(y2)
    assert y2.shape == x2.shape and y2.dtype == x2.dtype
    assert bool(jnp.array_equal(y2, x2)), "identity_copy mismatch (4 chunks)"

    print("KERNEL_OK")
</pallas_src>

<mosaic_0001>
module attributes {stable_mosaic.version = 11 : i64} {
  func.func @kernel(%arg0: memref<1x2048xf32, #tpu.memory_space<any>>, %arg1: memref<1x2048xf32, #tpu.memory_space<any>>, %arg2: memref<1x!tpu.dma_semaphore, #tpu.memory_space<semaphore_mem>>) attributes {dimension_semantics = [], scalar_prefetch = 0 : i64, scratch_operands = 1 : i64, tpu.core_type = #tpu.core_type<tc>} {
    %c0_i32 = arith.constant 0 : i32
    %c0_i32_0 = arith.constant 0 : i32
    %c0_i32_1 = arith.constant 0 : i32
    %0 = tpu.memref_slice %arg0[%c0_i32_0, %c0_i32_1] : memref<1x2048xf32, #tpu.memory_space<any>> -> memref<1x2048xf32, #tpu.memory_space<any>>
    %c0_i32_2 = arith.constant 0 : i32
    %c0_i32_3 = arith.constant 0 : i32
    %1 = tpu.memref_slice %arg1[%c0_i32_2, %c0_i32_3] : memref<1x2048xf32, #tpu.memory_space<any>> -> memref<1x2048xf32, #tpu.memory_space<any>>
    %2 = tpu.memref_slice %arg2[%c0_i32] : memref<1x!tpu.dma_semaphore, #tpu.memory_space<semaphore_mem>> -> memref<1x!tpu.dma_semaphore, #tpu.memory_space<semaphore_mem>>
    %3 = tpu.memref_squeeze %2 : memref<1x!tpu.dma_semaphore, #tpu.memory_space<semaphore_mem>> -> memref<!tpu.dma_semaphore, #tpu.memory_space<semaphore_mem>>
    tpu.enqueue_dma source(%0 : memref<1x2048xf32, #tpu.memory_space<any>>) target(%1 : memref<1x2048xf32, #tpu.memory_space<any>>) target_semaphore(%3 : memref<!tpu.dma_semaphore, #tpu.memory_space<semaphore_mem>>)
    %c0_i32_4 = arith.constant 0 : i32
    %c0_i32_5 = arith.constant 0 : i32
    %c0_i32_6 = arith.constant 0 : i32
    %4 = tpu.memref_slice %arg0[%c0_i32_5, %c0_i32_6] : memref<1x2048xf32, #tpu.memory_space<any>> -> memref<1x2048xf32, #tpu.memory_space<any>>
    %c0_i32_7 = arith.constant 0 : i32
    %c0_i32_8 = arith.constant 0 : i32
    %5 = tpu.memref_slice %arg1[%c0_i32_7, %c0_i32_8] : memref<1x2048xf32, #tpu.memory_space<any>> -> memref<1x2048xf32, #tpu.memory_space<any>>
    %6 = tpu.memref_slice %arg2[%c0_i32_4] : memref<1x!tpu.dma_semaphore, #tpu.memory_space<semaphore_mem>> -> memref<1x!tpu.dma_semaphore, #tpu.memory_space<semaphore_mem>>
    %7 = tpu.memref_squeeze %6 : memref<1x!tpu.dma_semaphore, #tpu.memory_space<semaphore_mem>> -> memref<!tpu.dma_semaphore, #tpu.memory_space<semaphore_mem>>
    tpu.wait_dma2 semaphore(%7 : memref<!tpu.dma_semaphore, #tpu.memory_space<semaphore_mem>>) src(%4 : memref<1x2048xf32, #tpu.memory_space<any>>) dst(%5 : memref<1x2048xf32, #tpu.memory_space<any>>)
    return
  }
}

</mosaic_0001>

<bundles_post_ra>
// kernel: tpu_custom_call.1
= control target key start
LH: loop header
LB: loop body
LE: loop exit
PB: predicated region body
PF: predicated region fallthrough
CT: control target
= control target key end

     0   :  { %s28_s6 = smov [#allocation2]   ;;  %s29_s7 = smov 131072   ;;  %s47_s0 = inlined_call_operand.hbm [shape: f32[1,2048], index: 0, kind: input, shape index: {}]   ;;  %s48_s1 = inlined_call_operand.hbm [shape: f32[1,2048], index: 1, kind: output, shape index: {}]  }
   0x1   :  { %s30_s8 = smov 0  }
   0x2   :  { %12 = dma.general %s47_s0, 256, %s48_s1, %s28_s6, %s29_s7, [#allocation4], %s30_s8, 0  }
   0x3   :  { %26 = dma.done.wait [#allocation2], 256 }
   0x4   :  { %27 = vsyncadd [#allocation2], 4294967040 }
   0x5   :  { %16 = vsyncmov [#allocation2] }
   0x8   :  { %s17_s13 = vpop.sfrf %16 }
   0x9   :  { %p22_p0 = scmp.ne.s32.totalorder %s17_s13, 0 }
   0xb   :  { %21 = shalt.err (%p22_p0)  }

</bundles_post_ra>
